<compile_context>
chip_gen: v5e
topology: v5e:2x2
jax: 0.10.0
libtpu: 0.0.40
codegen_flags: <defaults>
</compile_context>

<pallas_src>
import functools

import jax
import jax.numpy as jnp
import numpy as np
from jax import lax
from jax.experimental import pallas as pl
from jax.experimental.pallas import tpu as pltpu


# ---------------------------------------------------------------------------
# Constant operator matrices: slab = u @ Wu + v @ Wv
# ---------------------------------------------------------------------------
def _make_weights(ops, D, dtype):
    """Wu, Wv of shape (D, n_ops*D*D).

    Column k*D*D + i*D + j reconstructs op_k(u, v)[i, j]:
      vij     -> u[i] + u[j]
      vik     -> v[i] + v[j]
      vijk    -> u[i] + v[j]
      vikj    -> v[i] + u[j]
      vijksym -> 0.5 * (u[i] + v[j] + v[i] + u[j])
    Entries are 0 / 0.5 / 1 / 2 (exactly representable), built with += so the
    i == j diagonal gets the correct doubled coefficient.
    """
    n_ops = len(ops)
    wu = np.zeros((D, n_ops * D * D), dtype=np.float64)
    wv = np.zeros((D, n_ops * D * D), dtype=np.float64)
    for k, name in enumerate(ops):
        for i in range(D):
            for j in range(D):
                c = k * D * D + i * D + j
                if name == "vij":
                    wu[i, c] += 1.0
                    wu[j, c] += 1.0
                elif name == "vik":
                    wv[i, c] += 1.0
                    wv[j, c] += 1.0
                elif name == "vijk":
                    wu[i, c] += 1.0
                    wv[j, c] += 1.0
                elif name == "vikj":
                    wv[i, c] += 1.0
                    wu[j, c] += 1.0
                elif name == "vijksym":
                    wu[i, c] += 0.5
                    wv[j, c] += 0.5
                    wv[i, c] += 0.5
                    wu[j, c] += 0.5
                else:
                    raise ValueError(f"unknown operator {name!r}")
    return jnp.asarray(wu, dtype=dtype), jnp.asarray(wv, dtype=dtype)


# ---------------------------------------------------------------------------
# Kernels: one (tiny-K) MXU matmul per tile, single full-tile lane-dense store
# ---------------------------------------------------------------------------
def _edges_kernel(u_ref, w_ref, o_ref):
    # u_ref: (tn, D), w_ref: (D, n_ops*D*D), o_ref: (tn, n_ops*D*D)
    o_ref[...] = jnp.dot(
        u_ref[...],
        w_ref[...],
        precision=lax.Precision.HIGHEST,
        preferred_element_type=jnp.float32,
    ).astype(o_ref.dtype)


def _triplets_kernel(u_ref, v_ref, wu_ref, wv_ref, o_ref):
    # u_ref, v_ref: (tn, D); wu_ref, wv_ref: (D, n_ops*D*D)
    acc = jnp.dot(
        u_ref[...],
        wu_ref[...],
        precision=lax.Precision.HIGHEST,
        preferred_element_type=jnp.float32,
    )
    acc = acc + jnp.dot(
        v_ref[...],
        wv_ref[...],
        precision=lax.Precision.HIGHEST,
        preferred_element_type=jnp.float32,
    )
    o_ref[...] = acc.astype(o_ref.dtype)


# ---------------------------------------------------------------------------
# Tiling helpers
# ---------------------------------------------------------------------------
def _round_up(x, m):
    return ((x + m - 1) // m) * m


def _sublane(dtype):
    # f32 -> 8, bf16 -> 16, int8/fp8 -> 32
    return max(8, 32 // jnp.dtype(dtype).itemsize)


def _default_tn():
    """Per-generation default row tile (output double-buffer stays well inside
    the scoped-VMEM default on every generation)."""
    try:
        kind = jax.devices()[0].device_kind.lower()
    except Exception:
        return 2048
    if "v7" in kind:
        return 4096
    if "v5e" in kind or "v5 lite" in kind or "v5litepod" in kind:
        return 1024
    return 2048


def _choose_tile(N, tn, sublane):
    """Clamp the row tile to the problem size (multiple of the dtype sublane).
    For mid/large single-tile problems, halve the tile so the parallel grid
    has >= 2 steps (v7x megacore)."""
    tn_eff = min(tn, _round_up(max(N, 1), sublane))
    if N >= 2048 and N <= tn_eff:
        tn_eff = _round_up(-(-N // 2), sublane)
    return tn_eff


# ---------------------------------------------------------------------------
# Wrappers
# ---------------------------------------------------------------------------
def op_sym_skew_edges(u_ij, edge_ops, tn=None):
    """edges_ops = stack([op(u_ij) for op in edge_ops], axis=1)."""
    if len(edge_ops) == 0:
        return None
    N, D = u_ij.shape
    n_ops = len(edge_ops)
    if N == 0:
        return jnp.zeros((0, n_ops, D, D), u_ij.dtype)
    if tn is None:
        tn = _default_tn()
    tn_eff = _choose_tile(N, tn, _sublane(u_ij.dtype))
    # For edges v == u, so fold Wv into Wu.
    wu, wv = _make_weights(tuple(edge_ops), D, u_ij.dtype)
    w_e = wu + wv
    out = pl.pallas_call(
        _edges_kernel,
        out_shape=jax.ShapeDtypeStruct((N, n_ops * D * D), u_ij.dtype),
        grid_spec=pltpu.PrefetchScalarGridSpec(
            num_scalar_prefetch=0,
            grid=(pl.cdiv(N, tn_eff),),
            in_specs=[
                pl.BlockSpec((tn_eff, D), lambda i: (i, 0)),
                pl.BlockSpec((D, n_ops * D * D), lambda i: (0, 0)),
            ],
            out_specs=pl.BlockSpec((tn_eff, n_ops * D * D), lambda i: (i, 0)),
        ),
        compiler_params=pltpu.CompilerParams(dimension_semantics=("parallel",)),
    )(u_ij, w_e)
    return out.reshape(N, n_ops, D, D)  # free trailing-dim reshape


def op_sym_skew_triplets(u_ij, u_ik, triplet_ops, tn=None):
    """triplets_ops = stack([op(u_ij, u_ik) for op in triplet_ops], axis=1)."""
    if len(triplet_ops) == 0:
        return None
    N, D = u_ij.shape
    assert u_ik.shape == u_ij.shape
    n_ops = len(triplet_ops)
    if N == 0:
        return jnp.zeros((0, n_ops, D, D), u_ij.dtype)
    if tn is None:
        tn = _default_tn()
    tn_eff = _choose_tile(N, tn, _sublane(u_ij.dtype))
    wu, wv = _make_weights(tuple(triplet_ops), D, u_ij.dtype)
    out = pl.pallas_call(
        _triplets_kernel,
        out_shape=jax.ShapeDtypeStruct((N, n_ops * D * D), u_ij.dtype),
        grid_spec=pltpu.PrefetchScalarGridSpec(
            num_scalar_prefetch=0,
            grid=(pl.cdiv(N, tn_eff),),
            in_specs=[
                pl.BlockSpec((tn_eff, D), lambda i: (i, 0)),
                pl.BlockSpec((tn_eff, D), lambda i: (i, 0)),
                pl.BlockSpec((D, n_ops * D * D), lambda i: (0, 0)),
                pl.BlockSpec((D, n_ops * D * D), lambda i: (0, 0)),
            ],
            out_specs=pl.BlockSpec((tn_eff, n_ops * D * D), lambda i: (i, 0)),
        ),
        compiler_params=pltpu.CompilerParams(dimension_semantics=("parallel",)),
    )(u_ij, u_ik, wu, wv)
    return out.reshape(N, n_ops, D, D)  # free trailing-dim reshape


def op_sym_skew_forward(geometry, edge_ops, triplet_ops, normalize=True):
    """Mirror of OpSymSkew.forward; geometry is a dict of (N, D) arrays.

    normalize=True selects the unit-direction fields (u_*), else raw (v_*),
    exactly like the PyTorch module (the module only picks which geometry
    field feeds the operators).  Op order is fixed by the provided tuples
    (the PyTorch module iterates unordered python sets), so results are
    deterministic.
    """
    if normalize:
        e_u = geometry["edges_u_ij"]
        t_u, t_v = geometry["triplets_u_ij"], geometry["triplets_u_ik"]
    else:
        e_u = geometry["edges_v_ij"]
        t_u, t_v = geometry["triplets_v_ij"], geometry["triplets_v_ik"]
    edges_out = op_sym_skew_edges(e_u, edge_ops)
    triplets_out = op_sym_skew_triplets(t_u, t_v, triplet_ops)
    return edges_out, triplets_out


# ---------------------------------------------------------------------------
# Pure-JAX reference (for correctness check)
# ---------------------------------------------------------------------------
def _ref_op(name, u, v):
    if name == "vij":
        return u[:, :, None] + u[:, None, :]
    if name == "vik":
        return v[:, :, None] + v[:, None, :]
    if name == "vijk":
        return u[:, :, None] + v[:, None, :]
    if name == "vikj":
        return v[:, :, None] + u[:, None, :]
    if name == "vijksym":
        return 0.5 * (u[:, :, None] + v[:, None, :] + v[:, :, None] + u[:, None, :])
    raise ValueError(name)


def _ref_forward(geometry, edge_ops, triplet_ops, normalize=True):
    if normalize:
        e_u = geometry["edges_u_ij"]
        t_u, t_v = geometry["triplets_u_ij"], geometry["triplets_u_ik"]
    else:
        e_u = geometry["edges_v_ij"]
        t_u, t_v = geometry["triplets_v_ij"], geometry["triplets_v_ik"]
    e = jnp.stack([_ref_op(n, e_u, e_u) for n in edge_ops], axis=1) if edge_ops else None
    t = jnp.stack([_ref_op(n, t_u, t_v) for n in triplet_ops], axis=1) if triplet_ops else None
    return e, t


if __name__ == "__main__":
    key = jax.random.PRNGKey(0)
    D = 8

    def make_geometry(n_edges, n_triplets, key):
        k1, k2, k3 = jax.random.split(key, 3)
        edges_v_ij = jax.random.normal(k1, (n_edges, D), dtype=jnp.float32)
        triplets_v_ij = jax.random.normal(k2, (n_triplets, D), dtype=jnp.float32)
        triplets_v_ik = jax.random.normal(k3, (n_triplets, D), dtype=jnp.float32)
        return {
            "edges_v_ij": edges_v_ij,
            "edges_u_ij": edges_v_ij / jnp.linalg.norm(edges_v_ij, axis=-1, keepdims=True),
            "triplets_v_ij": triplets_v_ij,
            "triplets_u_ij": triplets_v_ij / jnp.linalg.norm(triplets_v_ij, axis=-1, keepdims=True),
            "triplets_v_ik": triplets_v_ik,
            "triplets_u_ik": triplets_v_ik / jnp.linalg.norm(triplets_v_ik, axis=-1, keepdims=True),
        }

    def check(got, ref):
        # HIGHEST-precision MXU (bf16x3) keeps f32 accuracy; a bf16 fallback
        # would be ~1e-3 off and still caught by this tolerance.
        np.testing.assert_allclose(np.asarray(got), np.asarray(ref), rtol=1e-6, atol=1e-5)

    # operators_edges = {OperatorVij()}; operators_triplets = all five operator types
    edge_ops = ("vij",)
    triplet_ops = ("vij", "vik", "vijk", "vikj", "vijksym")

    # Case 1: small, tile-aligned problem.
    geometry = make_geometry(16, 16, key)
    edges_out, triplets_out = op_sym_skew_forward(geometry, edge_ops, triplet_ops, normalize=True)
    edges_out = jax.block_until_ready(edges_out)
    triplets_out = jax.block_until_ready(triplets_out)
    edges_ref, triplets_ref = _ref_forward(geometry, edge_ops, triplet_ops, normalize=True)
    assert edges_out.shape == (16, len(edge_ops), D, D)
    assert triplets_out.shape == (16, len(triplet_ops), D, D)
    check(edges_out, edges_ref)
    check(triplets_out, triplets_ref)

    # Case 2: ragged row counts (partial last block, no pad / no slice) and
    # the normalize=False branch.
    geometry2 = make_geometry(20, 36, jax.random.PRNGKey(1))
    e2, t2 = op_sym_skew_forward(geometry2, edge_ops, triplet_ops, normalize=False)
    e2 = jax.block_until_ready(e2)
    t2 = jax.block_until_ready(t2)
    e2_ref, t2_ref = _ref_forward(geometry2, edge_ops, triplet_ops, normalize=False)
    check(e2, e2_ref)
    check(t2, t2_ref)

    # Case 3: multi-step grid (exercises the >=2-step megacore split and the
    # ragged final tile on every chip generation's default tile size).
    geometry3 = make_geometry(2060, 2060, jax.random.PRNGKey(2))
    e3, t3 = op_sym_skew_forward(geometry3, edge_ops, triplet_ops, normalize=True)
    e3 = jax.block_until_ready(e3)
    t3 = jax.block_until_ready(t3)
    e3_ref, t3_ref = _ref_forward(geometry3, edge_ops, triplet_ops, normalize=True)
    check(e3, e3_ref)
    check(t3, t3_ref)

    print("KERNEL_OK")
</pallas_src>

<mosaic_0001>
module attributes {stable_mosaic.version = 11 : i64} {
  func.func @_edges_kernel(%arg0: i32, %arg1: memref<16x8xf32, #tpu.memory_space<vmem>>, %arg2: memref<8x64xf32, #tpu.memory_space<vmem>>, %arg3: memref<16x64xf32, #tpu.memory_space<vmem>>) attributes {dimension_semantics = [#tpu.dimension_semantics<parallel>], iteration_bounds = array<i64: 1>, scalar_prefetch = 0 : i64, scratch_operands = 0 : i64, tpu.core_type = #tpu.core_type<tc>, window_params = [{transform_indices = @transform_0, window_bounds = array<i64: 16, 8>}, {pipeline_mode = #tpu.pipeline_mode<synchronous>, transform_indices = @transform_1, window_bounds = array<i64: 8, 64>}, {transform_indices = @transform_2, window_bounds = array<i64: 16, 64>}]} {
    %c0 = arith.constant 0 : index
    %c0_0 = arith.constant 0 : index
    %0 = vector.load %arg1[%c0, %c0_0] : memref<16x8xf32, #tpu.memory_space<vmem>>, vector<16x8xf32>
    %c0_1 = arith.constant 0 : index
    %c0_2 = arith.constant 0 : index
    %1 = vector.load %arg2[%c0_1, %c0_2] : memref<8x64xf32, #tpu.memory_space<vmem>>, vector<8x64xf32>
    %cst = arith.constant dense<0.000000e+00> : vector<16x64xf32>
    %2 = tpu.matmul %0, %1, %cst {dimension_numbers = #tpu.dot_dimension_numbers<[1], [0], [0], [1], [0, 0, 1, 1], [], []>, precision = #tpu.contract_precision<fp32>} : vector<16x8xf32>, vector<8x64xf32>, vector<16x64xf32> -> vector<16x64xf32>
    %c0_3 = arith.constant 0 : index
    %c0_4 = arith.constant 0 : index
    %3 = vector.load %arg3[%c0_3, %c0_4] : memref<16x64xf32, #tpu.memory_space<vmem>>, vector<16x64xf32>
    tpu.vector_store %arg3[%c0_3, %c0_4], %2 {strides = array<i32>} : memref<16x64xf32, #tpu.memory_space<vmem>>, vector<16x64xf32>,
    return
  }
  func.func @transform_0(%arg0: i32) -> (i32, i32) {
    %c0_i32 = arith.constant 0 : i32
    %c0_i32_0 = arith.constant 0 : i32
    return %arg0, %c0_i32 : i32, i32
  }
  func.func @transform_1(%arg0: i32) -> (i32, i32) {
    %c0_i32 = arith.constant 0 : i32
    %c0_i32_0 = arith.constant 0 : i32
    %c0_i32_1 = arith.constant 0 : i32
    return %c0_i32, %c0_i32_0 : i32, i32
  }
  func.func @transform_2(%arg0: i32) -> (i32, i32) {
    %c0_i32 = arith.constant 0 : i32
    %c0_i32_0 = arith.constant 0 : i32
    return %arg0, %c0_i32 : i32, i32
  }
}

</mosaic_0001>

<bundles_post_ra>
// kernel: tpu_custom_call.1
= control target key start
LH: loop header
LB: loop body
LE: loop exit
PB: predicated region body
PF: predicated region fallthrough
CT: control target
= control target key end

     0   :  { %vm15_vm0 = vcmask 64512   ;;  %s283_s0 = inlined_call_operand.vmem [shape: f32[16,8], index: 0, kind: input, shape index: {}]   ;;  %s284_s1 = inlined_call_operand.vmem [shape: f32[8,64], index: 1, kind: input, shape index: {}]   ;;  %s285_s2 = inlined_call_operand.hbm [shape: f32[16,64], index: 2, kind: output, shape index: {}]  }
   0x1   :  { %v14_v0 = vld [vmem:[%s284_s1] sm:$0xff]  ;;  %v13_v1 = vld [vmem:[%s283_s0 + $0x8] sm:$0xff] }
   0x2   :  { %v12_v2 = vld [vmem:[%s283_s0] sm:$0xff]  ;;  %v37_v3 = vand.u32 4294901760, %v14_v0  ;;  %v20_v4 = vsel %vm15_vm0, %v13_v1, 0 }
   0x3   :  { %v17_v5 = vsel %vm15_vm0, %v12_v2, 0 }
   0x4   :  { %7 = vsyncpa [#allocation3], 0  ;;  %v47_v6 = vand.u32 4294901760, %v20_v4  ;;  %v39_v7 = vand.u32 4294901760, %v17_v5  ;;  %220 = vmatpush.msra.mxu2 %v37_v3  ;;  %v72_v8 = vsub.f32 %v14_v0, %v37_v3  ;;  %38 = vmatpush.msra.mxu0 %v37_v3  ;;  %vm199_vm1 = vcmask 523264   ;;  %s251_s0 = smov [#allocation2]  }
   0x5   :  { %s206_s1 = sshll.u32 %s251_s0, 4  ;;  %s208_s17 = sshll.u32 %s285_s2, 4  ;;  %s207_s1 = int_to_ptr.vmem [resolvable:$true] %s206_s1  ;;  %s209_s17 = int_to_ptr.hbm [resolvable:$true] %s208_s17 }
   0x6   :  { %v48_v9 = vsub.f32 %v20_v4, %v47_v6  ;;  %v40_v10 = vsub.f32 %v17_v5, %v39_v7  ;;  %v73_v11 = vand.u32 4294901760, %v72_v8  ;;  %103 = vmatpush.msrb.mxu2 %v72_v8  ;;  %s252_s18 = smov 128   ;;  %s253_s19 = smov 8  }
   0x8   :  { %v49_v12 = vand.u32 4294901760, %v48_v9  ;;  %v41_v13 = vand.u32 4294901760, %v40_v10  ;;  %v74_v14 = vsub.f32 %v72_v8, %v73_v11  ;;  %163 = vmatpush.msrb.mxu0 %v73_v11 }
   0xa   :  { %v50_v15 = vsub.f32 %v48_v9, %v49_v12  ;;  %v42_v16 = vsub.f32 %v40_v10, %v41_v13  ;;  %v75_v17 = vand.u32 4294901760, %v74_v14 }
   0xc   :  { %v51_v18 = vand.u32 4294901760, %v50_v15  ;;  %v43_v19 = vand.u32 4294901760, %v42_v16  ;;  %221 = vmatpush.msra.mxu3 %v75_v17  ;;  %76 = vmatpush.msra.mxu1 %v75_v17 }
   0xd   :  { %82 = vmatmul.f32.vlgmr.msra.gmra.mxu3 %v47_v6  ;;  %78 = vmatmul.f32.vlgmr.msra.gmra.mxu1 %v39_v7 }
   0xe   :  { %52 = vmatmul.f32.vlgmr.msra.gmra.mxu2 %v51_v18  ;;  %131 = vmatpush.msrb.mxu3 %v37_v3 }
   0xf   :  { %44 = vmatmul.f32.vlgmr.msra.gmra.mxu0 %v43_v19  ;;  %189 = vmatpush.msrb.mxu1 %v37_v3 }
  0x15   :  { %135 = vmatmul.f32.vlgmr.msrb.gmra.mxu3 %v41_v13  ;;  %191 = vmatmul.f32.vlgmr.msrb.gmra.mxu1 %v39_v7 }
  0x16   :  { %106 = vmatmul.f32.vlgmr.msrb.gmra.mxu2 %v40_v10 }
  0x17   :  { %165 = vmatmul.f32.vlgmr.msrb.gmra.mxu0 %v39_v7 }
  0x1d   :  { %141 = vmatmul.f32.gmra.mxu3 %v49_v12  ;;  %195 = vmatmul.f32.gmra.mxu1 %v47_v6 }
  0x1e   :  { %111 = vmatmul.f32.gmra.mxu2 %v48_v9 }
  0x1f   :  { %169 = vmatmul.f32.gmra.mxu0 %v47_v6 }
  0x8a   :  { %v79_v23 = vpop.f32.mrf.mxu1 }
  0x8c   :  { %v45_v20 = vpop.f32.mrf.mxu0 }
  0x8d   :  { %v80_v24 = vadd.f32 %v79_v23, %v45_v20 }
  0x90   :  { %v83_v22 = vpop.f32.mrf.mxu3 }
  0x91   :  { %v53_v21 = vpop.f32.mrf.mxu2 }
  0x92   :  { %v192_v29 = vpop.f32.mrf.mxu1  ;;  %v84_v32 = vadd.f32 %v83_v22, %v53_v21 }
  0x94   :  { %v166_v25 = vpop.f32.mrf.mxu0 }
  0x98   :  { %v136_v27 = vpop.f32.mrf.mxu3 }
  0x99   :  { %v107_v26 = vpop.f32.mrf.mxu2 }
  0x9a   :  { %v108_v28 = vadd.f32 %v107_v26, %v80_v24  ;;  %v196_v39 = vpop.f32.mrf.mxu1 }
  0x9c   :  { %v137_v30 = vadd.f32 %v136_v27, %v108_v28  ;;  %v170_v37 = vpop.f32.mrf.mxu0 }
  0x9e   :  { %v167_v31 = vadd.f32 %v166_v25, %v137_v30 }
  0xa0   :  { %v193_v33 = vadd.f32 %v192_v29, %v167_v31  ;;  %v142_v35 = vpop.f32.mrf.mxu3 }
  0xa1   :  { %v112_v34 = vpop.f32.mrf.mxu2 }
  0xa2   :  { %200 = vst.msk [vmem:[#allocation2] sm:$0xff] %vm199_vm1, %v193_v33  ;;  %v113_v36 = vadd.f32 %v112_v34, %v84_v32 }
  0xa4   :  { %v143_v38 = vadd.f32 %v142_v35, %v113_v36 }
  0xa6   :  { %v171_v40 = vadd.f32 %v170_v37, %v143_v38 }
  0xa8   :  { %v197_v41 = vadd.f32 %v196_v39, %v171_v40 }
  0xaa   :  { %201 = vst.msk [vmem:[#allocation2 + $0x8] sm:$0xff] %vm199_vm1, %v197_v41 }
  0xab   :  { %214 = dma.vmem_to_hbm [thread:$0]  %s207_s1, 256, %s209_s17, [#allocation3], %s252_s18, %s252_s18, %s253_s19  }
  0xac   :  { %249 = dma.done.wait [#allocation3], 256  }
  0xad   :  { %250 = vsyncadd [#allocation3], 4294967040 }
  0xae   :  { %219 = vsyncpa [#allocation3], 1 }

</bundles_post_ra>
